<compile_context>
chip_gen: v7x
topology: tpu7x:2x2x1
jax: 0.10.0
libtpu: 0.0.40
codegen_flags: <defaults>
</compile_context>

<pallas_src>
import math

import jax
import jax.numpy as jnp
from jax.experimental import pallas as pl
from jax.experimental.pallas import tpu as pltpu


def _round_up(a, m):
    return ((a + m - 1) // m) * m


def conv_module_forward(x, weight, bias, bn_gamma, bn_beta, bn_mean, bn_var,
                        *, stride=1, padding=1, eps=1e-5, tile_h=None):
    """ConvModule forward: conv2d (stride=1, dilation=1, groups=1) + BN(eval) + ReLU.

    x:      (N, C_in, H, W)     NCHW, matching PyTorch
    weight: (C_out, C_in, K, K) PyTorch conv weight layout
    returns (N, C_out, H_out, W_out) float32
    """
    # TODO(synk): stride>1 / dilation>1 / groups>1 ConvModule configurations and
    # BN training-mode (batch statistics) are not implemented in the Pallas path
    # (module defaults are stride=1, dilation=1, groups=1; BN uses running stats).
    assert stride == 1, "Pallas path implements stride=1 (ConvModule default)"

    N, C_in, H, W = x.shape
    C_out, _, K, K2 = weight.shape
    assert K2 == K
    H_out = H + 2 * padding - K + 1
    W_out = W + 2 * padding - K + 1

    # ---- row-block tiling (rows_per_block = tile_h * W_out) ----------------
    m8 = 8 // math.gcd(W_out, 8)                  # tile_h multiple making rows % 8 == 0
    if tile_h is None:
        tile_h = _round_up(max(1, -(-512 // max(1, W_out))), m8)
        m256 = 256 // math.gcd(W_out, 256)        # prefer rows_per_block % 256 == 0
        if m256 * W_out <= 2048:
            tile_h = _round_up(tile_h, m256)
    else:
        tile_h = _round_up(max(1, int(tile_h)), m8)
    tile_h = min(tile_h, _round_up(H_out, m8))
    n_blocks = pl.cdiv(H_out, tile_h)
    H_out_pad = n_blocks * tile_h
    rows_per_block = tile_h * W_out               # divisible by 8 by construction

    # ---- glue: bf16 cast -> channels-last -> zero pad -> kw-pack ------------
    H_in_pad = H_out_pad + K - 1                  # rows the kernel may touch
    W_pad = W_out + K - 1                         # == W + 2*padding for stride=1
    bottom_pad = H_in_pad - H - padding           # >= padding
    x_nhwc = jnp.transpose(x.astype(jnp.bfloat16), (0, 2, 3, 1))   # cast BEFORE pad
    x_pad = jnp.pad(x_nhwc, ((0, 0), (padding, bottom_pad),
                             (padding, padding), (0, 0)))          # (N,H_in_pad,W_pad,Cin)
    # pack the K kw-shifts into channels: (N, H_in_pad, W_out, K*C_in)
    KC = K * C_in
    x_packed = jnp.concatenate(
        [x_pad[:, :, kw:kw + W_out, :] for kw in range(K)], axis=-1)

    # ---- weights (raw, bf16) + f32 per-channel scale / shift ----------------
    inv_std = jax.lax.rsqrt(bn_var.astype(jnp.float32) + eps)
    scale = bn_gamma.astype(jnp.float32) * inv_std                        # (C_out,)
    shift = (bias.astype(jnp.float32) - bn_mean.astype(jnp.float32)) * scale \
            + bn_beta.astype(jnp.float32)                                 # (C_out,)

    C_out_pad = _round_up(C_out, 128)             # lane-dense output stores
    w_t = jnp.transpose(weight.astype(jnp.float32), (2, 3, 1, 0))         # (K,K,Cin,Cout)
    w_t = jnp.pad(w_t, ((0, 0), (0, 0), (0, 0), (0, C_out_pad - C_out)))
    w_mat = w_t.reshape(K * K * C_in, C_out_pad).astype(jnp.bfloat16)     # [kh][kw][c] rows
    scale_p = jnp.pad(scale, (0, C_out_pad - C_out)).reshape(1, C_out_pad)
    shift_p = jnp.pad(shift, (0, C_out_pad - C_out)).reshape(1, C_out_pad)

    # ---- Pallas kernel: one fused dot + f32 scale/shift + ReLU --------------
    def kernel(x_ref, w_ref, scale_ref, shift_ref, o_ref):
        # x_ref:     (H_in_pad, W_out, K*C_in)      bf16, resident across row blocks
        # w_ref:     (K*K*C_in, C_out_pad)          bf16 (raw conv weights)
        # scale_ref: (1, C_out_pad) f32, shift_ref: (1, C_out_pad) f32
        # o_ref:     (rows_per_block, C_out_pad)    bf16
        i = pl.program_id(1)
        row0 = i * tile_h
        if tile_h % 8 == 0:
            row0 = pl.multiple_of(row0, 8)
        # im2col LHS: concat the K kh-shifted windows (kw already packed in lanes)
        lhs = jnp.concatenate(
            [x_ref[pl.ds(row0 + kh, tile_h), :, :].reshape(rows_per_block, KC)
             for kh in range(K)],
            axis=-1)                                             # (rows, K*K*C_in)
        acc = jnp.dot(lhs, w_ref[...], preferred_element_type=jnp.float32)
        y = acc * scale_ref[...] + shift_ref[...]                # BN(eval) in f32
        o_ref[...] = jnp.maximum(y, 0.0).astype(o_ref.dtype)     # ReLU, bf16 store

    # ---- VMEM budget (explicit; review item) --------------------------------
    img_bytes = H_in_pad * W_out * KC * 2
    out_bytes = rows_per_block * C_out_pad * 2
    w_bytes = K * K * C_in * C_out_pad * 2
    acc_bytes = rows_per_block * C_out_pad * 4
    vmem_need = 2 * (img_bytes + out_bytes + w_bytes + 2 * C_out_pad * 4) + 4 * acc_bytes
    vmem_limit = int(min(max(vmem_need + (8 << 20), 32 << 20), 64 << 20))
    # TODO(synk): for very large images on v7x (64 MiB VMEM), block the input
    # along H with a (tile_h + K - 1)-row halo via manual DMA instead of keeping
    # the full padded image resident per batch element.

    out_flat = pl.pallas_call(
        kernel,
        out_shape=jax.ShapeDtypeStruct((N, H_out_pad * W_out, C_out_pad), jnp.bfloat16),
        grid_spec=pltpu.PrefetchScalarGridSpec(
            num_scalar_prefetch=0,
            grid=(N, n_blocks),
            in_specs=[
                # full kw-packed image per batch element; constant block index
                # over the row-block axis -> stays resident in VMEM (no re-DMA).
                pl.BlockSpec((None, H_in_pad, W_out, KC), lambda b, i: (b, 0, 0, 0)),
                pl.BlockSpec((K * K * C_in, C_out_pad), lambda b, i: (0, 0)),
                pl.BlockSpec((1, C_out_pad), lambda b, i: (0, 0)),
                pl.BlockSpec((1, C_out_pad), lambda b, i: (0, 0)),
            ],
            out_specs=pl.BlockSpec((None, rows_per_block, C_out_pad),
                                   lambda b, i: (b, i, 0)),
        ),
        compiler_params=pltpu.CompilerParams(
            dimension_semantics=("parallel", "parallel"),
            vmem_limit_bytes=vmem_limit),
    )(x_packed, w_mat, scale_p, shift_p)

    # (N, Ho_pad*Wo, Cout_pad) -> slice pads -> NCHW f32 (single fused XLA pass)
    y = out_flat.reshape(N, H_out_pad, W_out, C_out_pad)[:, :H_out, :, :C_out]
    return jnp.transpose(y, (0, 3, 1, 2)).astype(jnp.float32)


def _reference(x, weight, bias, bn_gamma, bn_beta, bn_mean, bn_var,
               *, stride=1, padding=1, eps=1e-5):
    y = jax.lax.conv_general_dilated(
        x.astype(jnp.float32), weight.astype(jnp.float32),
        window_strides=(stride, stride),
        padding=[(padding, padding), (padding, padding)],
        dimension_numbers=("NCHW", "OIHW", "NCHW"),
        precision=jax.lax.Precision.HIGHEST)
    y = y + bias.reshape(1, -1, 1, 1)
    inv_std = 1.0 / jnp.sqrt(bn_var + eps)
    y = (y - bn_mean.reshape(1, -1, 1, 1)) * (bn_gamma * inv_std).reshape(1, -1, 1, 1) \
        + bn_beta.reshape(1, -1, 1, 1)
    return jnp.maximum(y, 0.0)


if __name__ == "__main__":
    key = jax.random.PRNGKey(0)
    ks = jax.random.split(key, 7)

    # ConvModule(in_channels=4, out_channels=32, kernel_size=3, padding=1,
    #            bias=True, normalize=BatchNorm2d, activation='relu', activate_last=True)
    N, C_in, H, W = 2, 4, 16, 16
    C_out, K = 32, 3

    x = jax.random.normal(ks[0], (N, C_in, H, W), dtype=jnp.float32)
    weight = jax.random.normal(ks[1], (C_out, C_in, K, K), dtype=jnp.float32) * 0.1
    bias = jax.random.normal(ks[2], (C_out,), dtype=jnp.float32) * 0.1
    bn_gamma = 1.0 + 0.1 * jax.random.normal(ks[3], (C_out,), dtype=jnp.float32)
    bn_beta = 0.1 * jax.random.normal(ks[4], (C_out,), dtype=jnp.float32)
    bn_mean = 0.05 * jax.random.normal(ks[5], (C_out,), dtype=jnp.float32)
    bn_var = jnp.abs(1.0 + 0.1 * jax.random.normal(ks[6], (C_out,), dtype=jnp.float32))

    ref = _reference(x, weight, bias, bn_gamma, bn_beta, bn_mean, bn_var)

    # default tiling (single row block per batch element for this small image)
    out = conv_module_forward(x, weight, bias, bn_gamma, bn_beta, bn_mean, bn_var)
    out = jax.block_until_ready(out)
    assert out.shape == (N, C_out, H, W), out.shape
    err = float(jnp.max(jnp.abs(out - ref)))
    assert jnp.allclose(out, ref, atol=5e-2, rtol=5e-2), err  # bf16 operands/output, f32 accumulate

    # exercise the multi-row-block + non-divisible (padded H_out) path too
    out2 = conv_module_forward(x, weight, bias, bn_gamma, bn_beta, bn_mean, bn_var, tile_h=6)
    out2 = jax.block_until_ready(out2)
    err2 = float(jnp.max(jnp.abs(out2 - ref)))
    assert out2.shape == (N, C_out, H, W), out2.shape
    assert jnp.allclose(out2, ref, atol=5e-2, rtol=5e-2), err2

    print("KERNEL_OK")
</pallas_src>

<mosaic_0001>
module attributes {stable_mosaic.version = 11 : i64} {
  func.func @kernel(%arg0: i32, %arg1: i32, %arg2: memref<1x18x16x12xbf16, #tpu.memory_space<vmem>>, %arg3: memref<36x128xbf16, #tpu.memory_space<vmem>>, %arg4: memref<1x128xf32, #tpu.memory_space<vmem>>, %arg5: memref<1x128xf32, #tpu.memory_space<vmem>>, %arg6: memref<1x256x128xbf16, #tpu.memory_space<vmem>>) attributes {dimension_semantics = [#tpu.dimension_semantics<parallel>, #tpu.dimension_semantics<parallel>], iteration_bounds = array<i64: 2, 1>, scalar_prefetch = 0 : i64, scratch_operands = 0 : i64, tpu.core_type = #tpu.core_type<tc>, window_params = [{transform_indices = @transform_0, window_bounds = array<i64: 1, 18, 16, 12>}, {pipeline_mode = #tpu.pipeline_mode<synchronous>, transform_indices = @transform_1, window_bounds = array<i64: 36, 128>}, {pipeline_mode = #tpu.pipeline_mode<synchronous>, transform_indices = @transform_2, window_bounds = array<i64: 1, 128>}, {pipeline_mode = #tpu.pipeline_mode<synchronous>, transform_indices = @transform_3, window_bounds = array<i64: 1, 128>}, {transform_indices = @transform_4, window_bounds = array<i64: 1, 256, 128>}]} {
    %c16_i32 = arith.constant 16 : i32
    %0 = arith.muli %arg1, %c16_i32 : i32
    %1 = tpu.assume_multiple %0, 8 : i32
    %c0_i32 = arith.constant 0 : i32
    %2 = arith.addi %1, %c0_i32 : i32
    %c0 = arith.constant 0 : index
    %3 = arith.index_cast %2 : i32 to index
    %c0_0 = arith.constant 0 : index
    %c0_1 = arith.constant 0 : index
    %4 = vector.load %arg2[%c0, %3, %c0_0, %c0_1] : memref<1x18x16x12xbf16, #tpu.memory_space<vmem>>, vector<1x16x16x12xbf16>
    %5 = vector.shape_cast %4 : vector<1x16x16x12xbf16> to vector<16x16x12xbf16>
    %6 = vector.shape_cast %5 : vector<16x16x12xbf16> to vector<256x12xbf16>
    %c1_i32 = arith.constant 1 : i32
    %7 = arith.addi %1, %c1_i32 : i32
    %c0_2 = arith.constant 0 : index
    %8 = arith.index_cast %7 : i32 to index
    %c0_3 = arith.constant 0 : index
    %c0_4 = arith.constant 0 : index
    %9 = vector.load %arg2[%c0_2, %8, %c0_3, %c0_4] : memref<1x18x16x12xbf16, #tpu.memory_space<vmem>>, vector<1x16x16x12xbf16>
    %10 = vector.shape_cast %9 : vector<1x16x16x12xbf16> to vector<16x16x12xbf16>
    %11 = vector.shape_cast %10 : vector<16x16x12xbf16> to vector<256x12xbf16>
    %c2_i32 = arith.constant 2 : i32
    %12 = arith.addi %1, %c2_i32 : i32
    %c0_5 = arith.constant 0 : index
    %13 = arith.index_cast %12 : i32 to index
    %c0_6 = arith.constant 0 : index
    %c0_7 = arith.constant 0 : index
    %14 = vector.load %arg2[%c0_5, %13, %c0_6, %c0_7] : memref<1x18x16x12xbf16, #tpu.memory_space<vmem>>, vector<1x16x16x12xbf16>
    %15 = vector.shape_cast %14 : vector<1x16x16x12xbf16> to vector<16x16x12xbf16>
    %16 = vector.shape_cast %15 : vector<16x16x12xbf16> to vector<256x12xbf16>
    %17 = tpu.concatenate %6, %11, %16 in 1 : vector<256x12xbf16>, vector<256x12xbf16>, vector<256x12xbf16> -> vector<256x36xbf16>
    %c0_8 = arith.constant 0 : index
    %c0_9 = arith.constant 0 : index
    %18 = vector.load %arg3[%c0_8, %c0_9] : memref<36x128xbf16, #tpu.memory_space<vmem>>, vector<36x128xbf16>
    %cst = arith.constant dense<0.000000e+00> : vector<256x128xf32>
    %19 = tpu.matmul %17, %18, %cst {dimension_numbers = #tpu.dot_dimension_numbers<[1], [0], [0], [1], [0, 0, 1, 1], [], []>} : vector<256x36xbf16>, vector<36x128xbf16>, vector<256x128xf32> -> vector<256x128xf32>
    %c0_10 = arith.constant 0 : index
    %c0_11 = arith.constant 0 : index
    %20 = vector.load %arg4[%c0_10, %c0_11] : memref<1x128xf32, #tpu.memory_space<vmem>>, vector<1x128xf32>
    %21 = vector.broadcast %20 : vector<1x128xf32> to vector<256x128xf32>
    %22 = arith.mulf %19, %21 : vector<256x128xf32>
    %c0_12 = arith.constant 0 : index
    %c0_13 = arith.constant 0 : index
    %23 = vector.load %arg5[%c0_12, %c0_13] : memref<1x128xf32, #tpu.memory_space<vmem>>, vector<1x128xf32>
    %24 = vector.broadcast %23 : vector<1x128xf32> to vector<256x128xf32>
    %25 = arith.addf %22, %24 : vector<256x128xf32>
    %cst_14 = arith.constant 0.000000e+00 : f32
    %26 = vector.broadcast %cst_14 : f32 to vector<256x128xf32>
    %27 = arith.maximumf %25, %26 : vector<256x128xf32>
    %28 = arith.truncf %27 : vector<256x128xf32> to vector<256x128xbf16>
    %c0_15 = arith.constant 0 : index
    %c0_16 = arith.constant 0 : index
    %c0_17 = arith.constant 0 : index
    %29 = vector.load %arg6[%c0_15, %c0_16, %c0_17] : memref<1x256x128xbf16, #tpu.memory_space<vmem>>, vector<1x256x128xbf16>
    %30 = vector.shape_cast %29 : vector<1x256x128xbf16> to vector<256x128xbf16>
    %31 = vector.shape_cast %28 : vector<256x128xbf16> to vector<1x256x128xbf16>
    tpu.vector_store %arg6[%c0_15, %c0_16, %c0_17], %31 {strides = array<i32>} : memref<1x256x128xbf16, #tpu.memory_space<vmem>>, vector<1x256x128xbf16>,
    return
  }
  func.func @transform_0(%arg0: i32, %arg1: i32) -> (i32, i32, i32, i32) {
    %c0_i32 = arith.constant 0 : i32
    %c0_i32_0 = arith.constant 0 : i32
    %c0_i32_1 = arith.constant 0 : i32
    %c0_i32_2 = arith.constant 0 : i32
    return %arg0, %c0_i32, %c0_i32_0, %c0_i32_1 : i32, i32, i32, i32
  }
  func.func @transform_1(%arg0: i32, %arg1: i32) -> (i32, i32) {
    %c0_i32 = arith.constant 0 : i32
    %c0_i32_0 = arith.constant 0 : i32
    %c0_i32_1 = arith.constant 0 : i32
    return %c0_i32, %c0_i32_0 : i32, i32
  }
  func.func @transform_2(%arg0: i32, %arg1: i32) -> (i32, i32) {
    %c0_i32 = arith.constant 0 : i32
    %c0_i32_0 = arith.constant 0 : i32
    %c0_i32_1 = arith.constant 0 : i32
    return %c0_i32, %c0_i32_0 : i32, i32
  }
  func.func @transform_3(%arg0: i32, %arg1: i32) -> (i32, i32) {
    %c0_i32 = arith.constant 0 : i32
    %c0_i32_0 = arith.constant 0 : i32
    %c0_i32_1 = arith.constant 0 : i32
    return %c0_i32, %c0_i32_0 : i32, i32
  }
  func.func @transform_4(%arg0: i32, %arg1: i32) -> (i32, i32, i32) {
    %c0_i32 = arith.constant 0 : i32
    %c0_i32_0 = arith.constant 0 : i32
    return %arg0, %arg1, %c0_i32 : i32, i32, i32
  }
}

</mosaic_0001>

<bundles_post_ra>
// kernel: tpu_custom_call.1
= control target key start
LH: loop header
LB: loop body
LE: loop exit
PB: predicated region body
PF: predicated region fallthrough
CT: control target
= control target key end

     0   :  { %9 = vsyncpa [#allocation3], 0  ;;  %s2235_s0 = inlined_call_operand.vmem [shape: bf16[2,18,16,12], index: 0, kind: input, shape index: {}]   ;;  %s2236_s1 = inlined_call_operand.vmem [shape: bf16[36,128], index: 1, kind: input, shape index: {}]   ;;  %s2237_s2 = inlined_call_operand.vmem [shape: f32[1,128], index: 2, kind: input, shape index: {}]   ;;  %s2238_s3 = inlined_call_operand.vmem [shape: f32[1,128], index: 3, kind: input, shape index: {}]   ;;  %s2239_s4 = inlined_call_operand.hbm [shape: bf16[2,256,128], index: 4, kind: output, shape index: {}]  }
   0x1   :  { %11 = vsyncpa [#allocation3 + $0x1], 0  ;;  %s1884_s15 = smov 0   ;;  %s1886_s16 = smov 0  }
   0x2   :  { %s1888_s17 = smov 0   ;;  %s1890_s18 = smov 0  }
   0x3   :  { %s1892_s19 = smov 0   ;;  %s1894_s20 = smov 0  }
   0x4 LB: > { %s1293_s21 = sadd.s32 4294967295, %s1852_s20   ;;  %s1294_s22 = sadd.s32 4294967294, %s1852_s20   ;;  %s1852_s20 = sphi %s1894_s20, %s17_s20   ;;  %s1848_s19 = sphi %s1892_s19, %s2246_s19   ;;  %s1844_s18 = sphi %s1890_s18, %s2245_s18   ;;  %s1840_s17 = sphi %s1888_s17, %s2244_s17   ;;  %s1836_s16 = sphi %s1886_s16, %s2243_s16   ;;  %s1832_s15 = sphi %s1884_s15, %s2242_s15  }
   0x5   : > { %s29_s23 = sadd.s32 1, %s1848_s19  ;;  %s127_s24 = sadd.s32 1, %s1840_s17 }
   0x6   : > { %p31_p0 = scmp.ge.s32.totalorder %s29_s23, 2  ;;  %p137_p1 = scmp.ne.s32.totalorder %s1840_s17, %s1836_s16 }
   0x7   : > { %p138_p2 = scmp.eq.s32.totalorder %s1293_s21, 1  ;;  %p143_p3 = scmp.ne.s32.totalorder %s1836_s16, %s1832_s15 }
   0x8   : > { %s2248_s23 = smov (%p31_p0, %s29_s23), 0  ;;  %p144_p5 = scmp.eq.s32.totalorder %s1294_s22, 1 }
   0x9   : > { %p1924_p4 = por %p138_p2, %p137_p1  ;;  %s122_s26 = ssub.s32 %s1848_s19, %s2248_s23 }
   0xa   : > { %p1297_p6 = scmp.ge.s32.totalorder %s1852_s20, 1  ;;  %p125_p7 = scmp.eq.s32.totalorder %s122_s26, 0 }
   0xb   : > { %p1931_p8 = por %p144_p5, %p143_p3  ;;  %p179_p9 = scmp.lt.s32.totalorder %s1852_s20, 3 }
   0xc   : > { %s1937_s28 = scalar_select %p125_p7, %s1840_s17, %s127_s24  }
   0xd   : > { %p180_p10 = pnand %p1297_p6, %p179_p9 }
   0xe   : > { %p205_p11 = scmp.lt.s32.totalorder (!%p180_p10), %s1844_s18, 1  ;;  %v1757_v0 = vld [vmem:[%s2236_s1] sm:$0xff] (!%p180_p10)   ;;  %v1760_v1 = vld [vmem:[%s2236_s1 + $0x8] sm:$0xff] (!%p180_p10)   ;;  %v1761_v2 = vld [vmem:[%s2236_s1 + $0x10] ss:$0 sps:$4 sm:$0x33] (!%p180_p10)  }
   0xf   : > { %183 = sbr.rel (%p180_p10) target bundleno = 442 (0x1ba), region = 36  ;;  %1617 = vmatprep.subr.bf16.mxu0 (!%p180_p10), %v1757_v0  ;;  %1655 = vmatprep.subr.bf16.mxu1 (!%p180_p10), %v1757_v0  ;;  %vm759_vm0 = vcmask (!%p180_p10), 1041408   ;;  %s1854_s14 = smov (!%p180_p10), 12   ;;  %vm624_vm1 = vcmask (!%p180_p10), 97280   ;;  %vm673_vm2 = vcmask (!%p180_p10), 195584   ;;  %vm726_vm3 = vcmask (!%p180_p10), 293888  }
  0x10   : > { %1618 = vmatpush3.bf16.msra.mxu0 (!%p180_p10), %v1757_v0  ;;  %1658 = vmatpush3.bf16.msra.mxu1 (!%p180_p10), %v1757_v0  ;;  %v761_v5 = vsel (!%p180_p10), %vm759_vm0, %v1761_v2, 0  ;;  %s1855_s21 = smov (!%p180_p10), 24   ;;  %s202_s30 = sand.u32 (!%p180_p10), 1, %s1836_s16  }
  0x11   : > { %1619 = vmatprep.subr.bf16.mxu0 (!%p180_p10), %v1760_v1  ;;  %1656 = vmatprep.subr.bf16.mxu1 (!%p180_p10), %v1760_v1  ;;  %s1298_s5 = sshll.u32 (!%p180_p10), %s202_s30, 7 }
  0x12   : > { %s2112_s6 = scalar_lea.vmem (!%p180_p10), [#allocation2], %s1298_s5 }
  0x14   : > { %1620 = vmatpush3.bf16.msra.mxu0 (!%p180_p10), %v1760_v1  ;;  %1659 = vmatpush3.bf16.msra.mxu1 (!%p180_p10), %v1760_v1 }
  0x15   : > { %1661 = vmatprep.subr.msk.bf16.mxu0 (!%p180_p10), %vm759_vm0, %v1761_v2  ;;  %1662 = vmatprep.subr.msk.bf16.mxu1 (!%p180_p10), %vm759_vm0, %v1761_v2 }
  0x16   : > { %s206_s7 = scalar_select %p205_p11, %s1844_s18, 1 }
  0x18   : > { %s1663_s8 = smul.u32 144, %s206_s7  ;;  %1622 = vmatpush3.bf16.msra.mxu0 %v761_v5  ;;  %1660 = vmatpush3.bf16.msra.mxu1 %v761_v5  ;;  %s1502_s7 = sshll.u32 %s1844_s18, 11 }
  0x19   : > { %s2179_s11 = scalar_lea.hbm %s2239_s4, %s1502_s7  ;;  %s2189_s18 = scalar_lea.sflag [#allocation3], %s202_s30 }
  0x1a   : > { %s1953_s13 = scalar_lea.vmem %s2235_s0, %s1663_s8  ;;  %s1210_s8 = sshll.u32 %s2112_s6, 4  ;;  %s2181_s8 = int_to_ptr.vmem [resolvable:$true] %s1210_s8 }
  0x1b   : > { %v1723_v3 = vld [vmem:[%s1953_s13 + $0x10] sm:$0xff]   ;;  %v1724_v4 = vld [vmem:[%s1953_s13 + $0x8] sm:$0xff]   ;;  %v1729_v10 = vld [vmem:[%s1953_s13 + $0x58] sm:$0xff]   ;;  %s1774_s12 = scalar_lea.vmem %s2181_s8, 2048 }
  0x1c   : > { %482 = vrot.lane.b32.xlu1 %v1723_v3, %s1854_s14  ;;  %v1725_v6 = vld [vmem:[%s1953_s13 + $0x50] sm:$0xff]   ;;  %480 = vrot.lane.b32.xlu0 %v1724_v4, %s1854_s14  ;;  %v1726_v7 = vld [vmem:[%s1953_s13 + $0x48] sm:$0xff]   ;;  %p1775_p12 = scmp.ne.s32.totalorder %s2181_s8, %s1774_s12 }
  0x1d   : > { %v1727_v8 = vld [vmem:[%s1953_s13 + $0x50] sm:$0xff]   ;;  %v1730_v11 = vld [vmem:[%s1953_s13 + $0x18] sm:$0xff]   ;;  %v1733_v14 = vld [vmem:[%s1953_s13 + $0x60] sm:$0xff]  }
  0x1e   : > { %v1728_v9 = vld [vmem:[%s1953_s13 + $0x10] sm:$0xff]   ;;  %v1731_v12 = vld [vmem:[%s1953_s13 + $0x58] sm:$0xff]   ;;  %v1734_v15 = vld [vmem:[%s1953_s13 + $0x20] sm:$0xff]   ;;  %p1776_p13 = pnand %p1775_p12, %p1924_p4 }
  0x1f   : > { %v1732_v13 = vld [vmem:[%s1953_s13 + $0x18] sm:$0xff]   ;;  %v1735_v16 = vld [vmem:[%s1953_s13 + $0x60] sm:$0xff]   ;;  %v1737_v18 = vld [vmem:[%s1953_s13 + $0x68] sm:$0xff]  }
  0x20   : > { %498 = vrot.lane.b32.xlu1 %v1725_v6, %s1854_s14  ;;  %496 = vrot.lane.b32.xlu0 %v1726_v7, %s1854_s14  ;;  %v1736_v17 = vld [vmem:[%s1953_s13 + $0x20] sm:$0xff]   ;;  %v1738_v19 = vld [vmem:[%s1953_s13 + $0x28] sm:$0xff]   ;;  %p1777_p0 = pneg %p1776_p13 }
  0x21   : > { %v1739_v20 = vld [vmem:[%s1953_s13 + $0x68] sm:$0xff]   ;;  %v1741_v22 = vld [vmem:[%s1953_s13 + $0x70] sm:$0xff]   ;;  %v1745_v26 = vld [vmem:[%s1953_s13 + $0x78] sm:$0xff]  }
  0x22   : > { %v1740_v21 = vld [vmem:[%s1953_s13 + $0x28] sm:$0xff]   ;;  %v1742_v23 = vld [vmem:[%s1953_s13 + $0x30] sm:$0xff]   ;;  %v1746_v27 = vld [vmem:[%s1953_s13 + $0x38] sm:$0xff]  }
  0x23   : > { %v1743_v24 = vld [vmem:[%s1953_s13 + $0x70] sm:$0xff]   ;;  %v1747_v28 = vld [vmem:[%s1953_s13 + $0x78] sm:$0xff]   ;;  %v1749_v30 = vld [vmem:[%s1953_s13 + $0x80] sm:$0xff]  }
  0x24   : > { %608 = vrot.lane.b32.xlu1 %v1727_v8, %s1855_s21  ;;  %592 = vrot.lane.b32.xlu0 %v1728_v9, %s1855_s21  ;;  %v1744_v25 = vld [vmem:[%s1953_s13 + $0x30] sm:$0xff]   ;;  %v1748_v29 = vld [vmem:[%s1953_s13 + $0x38] sm:$0xff]  }
  0x25   : > { %v1750_v31 = vld [vmem:[%s1953_s13 + $0x40] sm:$0xff]   ;;  %v1753_v34 = vld [vmem:[%s1953_s13 + $0x88] sm:$0xff]   ;;  %v1762_v58 = vld [vmem:[%s1953_s13 + $0x50] sm:$0xff]  }
  0x26   : > { %v1751_v32 = vld [vmem:[%s1953_s13 + $0x80] sm:$0xff]   ;;  %v1754_v35 = vld [vmem:[%s1953_s13 + $0x48] sm:$0xff]   ;;  %v1763_v60 = vld [vmem:[%s1953_s13 + $0x10] sm:$0xff]  }
  0x27   : > { %v1752_v33 = vld [vmem:[%s1953_s13 + $0x40] sm:$0xff]   ;;  %v1758_v42 = vld [vmem:[%s1953_s13 + $0x48] sm:$0xff]   ;;  %v1764_v63 = vld [vmem:[%s1953_s13 + $0x58] sm:$0xff]  }
  0x28   : > { %610 = vrot.lane.b32.xlu1 %v1729_v10, %s1855_s21  ;;  %594 = vrot.lane.b32.xlu0 %v1730_v11, %s1855_s21  ;;  %v1759_v39 = vld [vmem:[%s1953_s13 + $0x40] sm:$0xff]   ;;  %v1755_v45 = vld [vmem:[%s1953_s13 + $0x8] sm:$0xff]  }
  0x29   : > { %v1756_v40 = vld [vmem:[%s1953_s13] sm:$0xff]   ;;  %v1765_v2 = vld [vmem:[%s1953_s13 + $0x18] sm:$0xff]  }
  0x2c   : > { %500 = vrot.lane.b32.xlu1 %v1731_v12, %s1854_s14  ;;  %484 = vrot.lane.b32.xlu0 %v1732_v13, %s1854_s14 }
  0x30   : > { %502 = vrot.lane.b32.xlu1 %v1733_v14, %s1854_s14  ;;  %486 = vrot.lane.b32.xlu0 %v1734_v15, %s1854_s14  ;;  %v1766_v14 = vld [vmem:[%s1953_s13 + $0x60] sm:$0xff]  }
  0x34   : > { %612 = vrot.lane.b32.xlu1 %v1735_v16, %s1855_s21  ;;  %596 = vrot.lane.b32.xlu0 %v1736_v17, %s1855_s21  ;;  %v1767_v16 = vld [vmem:[%s1953_s13 + $0x20] sm:$0xff]  }
  0x38   : > { %614 = vrot.lane.b32.xlu1 %v1737_v18, %s1855_s21  ;;  %598 = vrot.lane.b32.xlu0 %v1738_v19, %s1855_s21  ;;  %v1768_v19 = vld [vmem:[%s1953_s13 + $0x68] sm:$0xff]  }
  0x3c   : > { %504 = vrot.lane.b32.xlu1 %v1739_v20, %s1854_s14  ;;  %488 = vrot.lane.b32.xlu0 %v1740_v21, %s1854_s14 }
  0x40   : > { %506 = vrot.lane.b32.xlu1 %v1741_v22, %s1854_s14  ;;  %490 = vrot.lane.b32.xlu0 %v1742_v23, %s1854_s14  ;;  %v1769_v22 = vld [vmem:[%s1953_s13 + $0x28] sm:$0xff]  }
  0x44   : > { %616 = vrot.lane.b32.xlu1 %v1743_v24, %s1855_s21  ;;  %600 = vrot.lane.b32.xlu0 %v1744_v25, %s1855_s21 }
  0x48   : > { %618 = vrot.lane.b32.xlu1 %v1745_v26, %s1855_s21  ;;  %602 = vrot.lane.b32.xlu0 %v1746_v27, %s1855_s21 }
  0x4c   : > { %508 = vrot.lane.b32.xlu1 %v1747_v28, %s1854_s14  ;;  %492 = vrot.lane.b32.xlu0 %v1748_v29, %s1854_s14 }
  0x50   : > { %510 = vrot.lane.b32.xlu1 %v1749_v30, %s1854_s14  ;;  %494 = vrot.lane.b32.xlu0 %v1750_v31, %s1854_s14 }
  0x54   : > { %620 = vrot.lane.b32.xlu1 %v1751_v32, %s1855_s21  ;;  %604 = vrot.lane.b32.xlu0 %v1752_v33, %s1855_s21 }
  0x58   : > { %622 = vrot.lane.b32.xlu1 %v1753_v34, %s1855_s21  ;;  %606 = vrot.lane.b32.xlu0 %v1754_v35, %s1855_s21  ;;  %v1770_v34 = vld [vmem:[%s1953_s13 + $0x70] sm:$0xff]  }
  0x8e   : > { %v483_v36 = vpop.permute.xlu1 %482  ;;  %v481_v37 = vpop.permute.xlu0 %480 }
  0x8f   : > { %v627_v46 = vsel %vm624_vm1, %v1756_v40, %v481_v37  ;;  %v630_v52 = vsel %vm624_vm1, %v1755_v45, %v483_v36  ;;  %v1771_v36 = vld [vmem:[%s1953_s13 + $0x30] sm:$0xff]  }
  0x92   : > { %v499_v38 = vpop.permute.xlu1 %498  ;;  %v497_v41 = vpop.permute.xlu0 %496 }
  0x93   : > { %v651_v43 = vsel %vm624_vm1, %v1759_v39, %v497_v41  ;;  %v654_v50 = vsel %vm624_vm1, %v1758_v42, %v499_v38  ;;  %v1772_v39 = vld [vmem:[%s1953_s13 + $0x78] sm:$0xff]  }
  0x94   : > { %v1773_v42 = vld [vmem:[%s1953_s13 + $0x38] sm:$0xff]   ;;  %s1856_s13 = smov [#allocation2]  }
  0x95   : > { %s1778_s14 = sshll.u32 %s1856_s13, 4  ;;  %s1779_s14 = int_to_ptr.vmem [resolvable:$false] %s1778_s14 }
  0x96   : > { %v609_v44 = vpop.permute.xlu1 %608  ;;  %v593_v47 = vpop.permute.xlu0 %592  ;;  %s1780_s21 = scalar_lea.vmem %s1779_s14, 4096  ;;  %p1781_p1 = scmp.lt.s32.totalorder %s2181_s8, %s1779_s14 }
  0x97   : > { %v691_v48 = vsel %vm673_vm2, %v651_v43, %v609_v44  ;;  %v675_v49 = vsel %vm673_vm2, %v627_v46, %v593_v47  ;;  %p1782_p2 = scmp.lt.s32.totalorder %s1780_s21, %s1774_s12 }
  0x98   : > { %1639 = vmatprep.mubr.msk.bf16.mxu1 %vm726_vm3, %v691_v48  ;;  %1623 = vmatprep.mubr.msk.bf16.mxu0 %vm726_vm3, %v675_v49 }
  0x99   : > { %p1783_p3 = por %p1782_p2, %p1781_p1 }
  0x9a   : > { %v611_v51 = vpop.permute.xlu1 %610  ;;  %v595_v54 = vpop.permute.xlu0 %594 }
  0x9b   : > { %v693_v53 = vsel %vm673_vm2, %v654_v50, %v611_v51  ;;  %v677_v55 = vsel %vm673_vm2, %v630_v52, %v595_v54  ;;  %v2086_v52 = vld [vmem:[%s2237_s2] ss:$0 sm:$0xff]  ;;  %p1784_p5 = pnand %p1783_p3, %p1777_p0 }
  0x9c   : > { %1640 = vmatmul.mubr.msk.bf16.vlgmr.msra.gmra.mrb[0].mxu1 %vm726_vm3, %v693_v53  ;;  %1624 = vmatmul.mubr.msk.bf16.vlgmr.msra.gmra.mrb[0].mxu0 %vm726_vm3, %v677_v55  ;;  %v2091_v53 = vld [vmem:[%s2238_s3] ss:$0 sm:$0xff] }
  0x9e   : > { %v501_v56 = vpop.permute.xlu1 %500  ;;  %v485_v57 = vpop.permute.xlu0 %484 }
  0x9f   : > { %v657_v62 = vsel %vm624_vm1, %v1762_v58, %v501_v56  ;;  %v633_v1 = vsel %vm624_vm1, %v1763_v60, %v485_v57 }
  0xa2   : > { %v503_v59 = vpop.permute.xlu1 %502  ;;  %v487_v61 = vpop.permute.xlu0 %486 }
  0xa3   : > { %v660_v6 = vsel %vm624_vm1, %v1764_v63, %v503_v59  ;;  %v636_v8 = vsel %vm624_vm1, %v1765_v2, %v487_v61 }
  0xa6   : > { %v613_v0 = vpop.permute.xlu1 %612  ;;  %v597_v4 = vpop.permute.xlu0 %596 }
  0xa7   : > { %v695_v3 = vsel %vm673_vm2, %v657_v62, %v613_v0  ;;  %v679_v5 = vsel %vm673_vm2, %v633_v1, %v597_v4 }
  0xa8   : > { %1643 = vmatprep.mubr.msk.bf16.mxu1 %vm726_vm3, %v695_v3  ;;  %1627 = vmatprep.mubr.msk.bf16.mxu0 %vm726_vm3, %v679_v5 }
  0xaa   : > { %v615_v7 = vpop.permute.xlu1 %614  ;;  %v599_v10 = vpop.permute.xlu0 %598 }
  0xab   : > { %v697_v9 = vsel %vm673_vm2, %v660_v6, %v615_v7  ;;  %v681_v11 = vsel %vm673_vm2, %v636_v8, %v599_v10 }
  0xac   : > { %1644 = vmatmul.mubr.msk.bf16.gmra.mrb[4].mxu1 %vm726_vm3, %v697_v9  ;;  %1628 = vmatmul.mubr.msk.bf16.gmra.mrb[4].mxu0 %vm726_vm3, %v681_v11 }
  0xae   : > { %v505_v12 = vpop.permute.xlu1 %504  ;;  %v489_v13 = vpop.permute.xlu0 %488 }
  0xaf   : > { %v663_v18 = vsel %vm624_vm1, %v1766_v14, %v505_v12  ;;  %v639_v21 = vsel %vm624_vm1, %v1767_v16, %v489_v13 }
  0xb2   : > { %v507_v15 = vpop.permute.xlu1 %506  ;;  %v491_v17 = vpop.permute.xlu0 %490 }
  0xb3   : > { %v666_v26 = vsel %vm624_vm1, %v1768_v19, %v507_v15  ;;  %v642_v28 = vsel %vm624_vm1, %v1769_v22, %v491_v17 }
  0xb6   : > { %v617_v20 = vpop.permute.xlu1 %616  ;;  %v601_v24 = vpop.permute.xlu0 %600 }
  0xb7   : > { %v699_v23 = vsel %vm673_vm2, %v663_v18, %v617_v20  ;;  %v683_v25 = vsel %vm673_vm2, %v639_v21, %v601_v24 }
  0xb8   : > { %1647 = vmatprep.mubr.msk.bf16.mxu1 %vm726_vm3, %v699_v23  ;;  %1631 = vmatprep.mubr.msk.bf16.mxu0 %vm726_vm3, %v683_v25 }
  0xba   : > { %v619_v27 = vpop.permute.xlu1 %618  ;;  %v603_v30 = vpop.permute.xlu0 %602 }
  0xbb   : > { %v701_v29 = vsel %vm673_vm2, %v666_v26, %v619_v27  ;;  %v685_v31 = vsel %vm673_vm2, %v642_v28, %v603_v30 }
  0xbc   : > { %1648 = vmatmul.mubr.msk.bf16.gmra.mrb[8].mxu1 %vm726_vm3, %v701_v29  ;;  %1632 = vmatmul.mubr.msk.bf16.gmra.mrb[8].mxu0 %vm726_vm3, %v685_v31 }
  0xbe   : > { %v509_v32 = vpop.permute.xlu1 %508  ;;  %v493_v33 = vpop.permute.xlu0 %492 }
  0xbf   : > { %v669_v38 = vsel %vm624_vm1, %v1770_v34, %v509_v32  ;;  %v645_v41 = vsel %vm624_vm1, %v1771_v36, %v493_v33 }
  0xc2   : > { %v511_v35 = vpop.permute.xlu1 %510  ;;  %v495_v37 = vpop.permute.xlu0 %494 }
  0xc3   : > { %v672_v46 = vsel %vm624_vm1, %v1772_v39, %v511_v35  ;;  %v648_v48 = vsel %vm624_vm1, %v1773_v42, %v495_v37 }
  0xc6   : > { %v621_v40 = vpop.permute.xlu1 %620  ;;  %v605_v44 = vpop.permute.xlu0 %604 }
  0xc7   : > { %v703_v43 = vsel %vm673_vm2, %v669_v38, %v621_v40  ;;  %v687_v45 = vsel %vm673_vm2, %v645_v41, %v605_v44 }
  0xc8   : > { %1651 = vmatprep.mubr.msk.bf16.mxu1 %vm726_vm3, %v703_v43  ;;  %1635 = vmatprep.mubr.msk.bf16.mxu0 %vm726_vm3, %v687_v45 }
  0xca   : > { %v623_v47 = vpop.permute.xlu1 %622  ;;  %v607_v50 = vpop.permute.xlu0 %606 }
  0xcb   : > { %v705_v49 = vsel %vm673_vm2, %v672_v46, %v623_v47  ;;  %v689_v51 = vsel %vm673_vm2, %v648_v48, %v607_v50 }
  0xcc   : > { %1652 = vmatmul.mubr.msk.bf16.gmra.mrb[12].mxu1 %vm726_vm3, %v705_v49  ;;  %1636 = vmatmul.mubr.msk.bf16.gmra.mrb[12].mxu0 %vm726_vm3, %v689_v51 }
 0x16f   : > { %v1641_v54 = vpop.f32.mrb[0].mxu1  ;;  %v1625_v55 = vpop.f32.mrb[0].mxu0 }
 0x170   : > { %v949_v56 = vmul.f32 %v1641_v54, %v2086_v52  ;;  %v861_v57 = vpop.f32.mrb[1].mxu1  ;;  %v933_v58 = vmul.f32 %v1625_v55, %v2086_v52  ;;  %v797_v59 = vpop.f32.mrb[1].mxu0 }
 0x171   : > { %v947_v60 = vmul.f32 %v2086_v52, %v861_v57  ;;  %v1642_v61 = vpop.f32.mrb[2].mxu1  ;;  %v931_v63 = vmul.f32 %v2086_v52, %v797_v59  ;;  %v1626_v0 = vpop.f32.mrb[2].mxu0 }
 0x172   : > { %v988_v62 = vadd.f32 %v2091_v53, %v949_v56  ;;  %v950_v1 = vmul.f32 %v1642_v61, %v2086_v52  ;;  %v864_v2 = vpop.f32.mrb[3].mxu1  ;;  %v972_v3 = vadd.f32 %v2091_v53, %v933_v58  ;;  %v934_v5 = vmul.f32 %v1626_v0, %v2086_v52  ;;  %v800_v6 = vpop.f32.mrb[3].mxu0 }
 0x173   : > { %v986_v4 = vadd.f32 %v2091_v53, %v947_v60  ;;  %v948_v7 = vmul.f32 %v2086_v52, %v864_v2  ;;  %v970_v8 = vadd.f32 %v2091_v53, %v931_v63  ;;  %v932_v10 = vmul.f32 %v2086_v52, %v800_v6 }
 0x174   : > { %v989_v9 = vadd.f32 %v2091_v53, %v950_v1  ;;  %v973_v11 = vadd.f32 %v2091_v53, %v934_v5  ;;  %v1020_v13 = vmax.f32 %v988_v62, 0.0  ;;  %v1004_v16 = vmax.f32 %v972_v3, 0.0 }
 0x175   : > { %v987_v12 = vadd.f32 %v2091_v53, %v948_v7  ;;  %v971_v15 = vadd.f32 %v2091_v53, %v932_v10  ;;  %v1018_v17 = vmax.f32 %v986_v4, 0.0  ;;  %v1002_v20 = vmax.f32 %v970_v8, 0.0 }
 0x176   : > { %v1021_v14 = vmax.f32 %v989_v9, 0.0  ;;  %v1005_v18 = vmax.f32 %v973_v11, 0.0 }
 0x177   : > { %v1019_v19 = vmax.f32 %v987_v12, 0.0  ;;  %v1003_v22 = vmax.f32 %v971_v15, 0.0 }
 0x178   : > { %v1551_v21 = vpack.c.bf16 %v1021_v14, %v1020_v13  ;;  %v1511_v23 = vpack.c.bf16 %v1005_v18, %v1004_v16 }
 0x179   : > { %v1546_v24 = vpack.c.bf16 %v1019_v19, %v1018_v17  ;;  %v1506_v25 = vpack.c.bf16 %v1003_v22, %v1002_v20 }
 0x17a   : > { %1591 = vst [vmem:[%s2112_s6 + $0x48] sm:$0xff] %v1551_v21   ;;  %1583 = vst [vmem:[%s2112_s6 + $0x8] sm:$0xff] %v1511_v23  }
 0x17b   : > { %1590 = vst [vmem:[%s2112_s6 + $0x40] sm:$0xff] %v1546_v24   ;;  %1507 = vst [vmem:[%s2112_s6] sm:$0xff] %v1506_v25  }
 0x17f   : > { %v1645_v26 = vpop.f32.mrb[4].mxu1  ;;  %v1629_v27 = vpop.f32.mrb[4].mxu0 }
 0x180   : > { %v953_v28 = vmul.f32 %v1645_v26, %v2086_v52  ;;  %v877_v29 = vpop.f32.mrb[5].mxu1  ;;  %v937_v30 = vmul.f32 %v1629_v27, %v2086_v52  ;;  %v813_v31 = vpop.f32.mrb[5].mxu0 }
 0x181   : > { %v951_v32 = vmul.f32 %v2086_v52, %v877_v29  ;;  %v1646_v33 = vpop.f32.mrb[6].mxu1  ;;  %v935_v35 = vmul.f32 %v2086_v52, %v813_v31  ;;  %v1630_v36 = vpop.f32.mrb[6].mxu0 }
 0x182   : > { %v992_v34 = vadd.f32 %v2091_v53, %v953_v28  ;;  %v954_v37 = vmul.f32 %v1646_v33, %v2086_v52  ;;  %v880_v38 = vpop.f32.mrb[7].mxu1  ;;  %v976_v39 = vadd.f32 %v2091_v53, %v937_v30  ;;  %v938_v41 = vmul.f32 %v1630_v36, %v2086_v52  ;;  %v816_v42 = vpop.f32.mrb[7].mxu0 }
 0x183   : > { %v990_v40 = vadd.f32 %v2091_v53, %v951_v32  ;;  %v952_v43 = vmul.f32 %v2086_v52, %v880_v38  ;;  %v974_v44 = vadd.f32 %v2091_v53, %v935_v35  ;;  %v936_v46 = vmul.f32 %v2086_v52, %v816_v42 }
 0x184   : > { %v993_v45 = vadd.f32 %v2091_v53, %v954_v37  ;;  %v977_v47 = vadd.f32 %v2091_v53, %v938_v41  ;;  %v1024_v49 = vmax.f32 %v992_v34, 0.0  ;;  %v1008_v54 = vmax.f32 %v976_v39, 0.0 }
 0x185   : > { %v991_v48 = vadd.f32 %v2091_v53, %v952_v43  ;;  %v975_v51 = vadd.f32 %v2091_v53, %v936_v46  ;;  %v1022_v55 = vmax.f32 %v990_v40, 0.0  ;;  %v1006_v58 = vmax.f32 %v974_v44, 0.0 }
 0x186   : > { %v1025_v50 = vmax.f32 %v993_v45, 0.0  ;;  %v1009_v56 = vmax.f32 %v977_v47, 0.0 }
 0x187   : > { %v1023_v57 = vmax.f32 %v991_v48, 0.0  ;;  %v1007_v60 = vmax.f32 %v975_v51, 0.0 }
 0x188   : > { %v1561_v59 = vpack.c.bf16 %v1025_v50, %v1024_v49  ;;  %v1521_v61 = vpack.c.bf16 %v1009_v56, %v1008_v54 }
 0x189   : > { %v1556_v62 = vpack.c.bf16 %v1023_v57, %v1022_v55  ;;  %v1516_v63 = vpack.c.bf16 %v1007_v60, %v1006_v58 }
 0x18a   : > { %1593 = vst [vmem:[%s2112_s6 + $0x58] sm:$0xff] %v1561_v59   ;;  %1585 = vst [vmem:[%s2112_s6 + $0x18] sm:$0xff] %v1521_v61  }
 0x18b   : > { %1592 = vst [vmem:[%s2112_s6 + $0x50] sm:$0xff] %v1556_v62   ;;  %1584 = vst [vmem:[%s2112_s6 + $0x10] sm:$0xff] %v1516_v63  }
 0x18f   : > { %v1649_v0 = vpop.f32.mrb[8].mxu1  ;;  %v1633_v1 = vpop.f32.mrb[8].mxu0 }
 0x190   : > { %v957_v2 = vmul.f32 %v1649_v0, %v2086_v52  ;;  %v893_v3 = vpop.f32.mrb[9].mxu1  ;;  %v941_v4 = vmul.f32 %v1633_v1, %v2086_v52  ;;  %v829_v5 = vpop.f32.mrb[9].mxu0 }
 0x191   : > { %v955_v6 = vmul.f32 %v2086_v52, %v893_v3  ;;  %v1650_v7 = vpop.f32.mrb[10].mxu1  ;;  %v939_v9 = vmul.f32 %v2086_v52, %v829_v5  ;;  %v1634_v10 = vpop.f32.mrb[10].mxu0 }
 0x192   : > { %v996_v8 = vadd.f32 %v2091_v53, %v957_v2  ;;  %v958_v11 = vmul.f32 %v1650_v7, %v2086_v52  ;;  %v896_v12 = vpop.f32.mrb[11].mxu1  ;;  %v980_v13 = vadd.f32 %v2091_v53, %v941_v4  ;;  %v942_v15 = vmul.f32 %v1634_v10, %v2086_v52  ;;  %v832_v16 = vpop.f32.mrb[11].mxu0 }
 0x193   : > { %v994_v14 = vadd.f32 %v2091_v53, %v955_v6  ;;  %v956_v17 = vmul.f32 %v2086_v52, %v896_v12  ;;  %v978_v18 = vadd.f32 %v2091_v53, %v939_v9  ;;  %v940_v20 = vmul.f32 %v2086_v52, %v832_v16 }
 0x194   : > { %v997_v19 = vadd.f32 %v2091_v53, %v958_v11  ;;  %v981_v21 = vadd.f32 %v2091_v53, %v942_v15  ;;  %v1028_v23 = vmax.f32 %v996_v8, 0.0  ;;  %v1012_v26 = vmax.f32 %v980_v13, 0.0 }
 0x195   : > { %v995_v22 = vadd.f32 %v2091_v53, %v956_v17  ;;  %v979_v25 = vadd.f32 %v2091_v53, %v940_v20  ;;  %v1026_v27 = vmax.f32 %v994_v14, 0.0  ;;  %v1010_v30 = vmax.f32 %v978_v18, 0.0 }
 0x196   : > { %v1029_v24 = vmax.f32 %v997_v19, 0.0  ;;  %v1013_v28 = vmax.f32 %v981_v21, 0.0 }
 0x197   : > { %v1027_v29 = vmax.f32 %v995_v22, 0.0  ;;  %v1011_v32 = vmax.f32 %v979_v25, 0.0 }
 0x198   : > { %v1571_v31 = vpack.c.bf16 %v1029_v24, %v1028_v23  ;;  %v1531_v33 = vpack.c.bf16 %v1013_v28, %v1012_v26 }
 0x199   : > { %v1566_v34 = vpack.c.bf16 %v1027_v29, %v1026_v27  ;;  %v1526_v35 = vpack.c.bf16 %v1011_v32, %v1010_v30 }
 0x19a   : > { %1595 = vst [vmem:[%s2112_s6 + $0x68] sm:$0xff] %v1571_v31   ;;  %1587 = vst [vmem:[%s2112_s6 + $0x28] sm:$0xff] %v1531_v33  }
 0x19b   : > { %1594 = vst [vmem:[%s2112_s6 + $0x60] sm:$0xff] %v1566_v34   ;;  %1586 = vst [vmem:[%s2112_s6 + $0x20] sm:$0xff] %v1526_v35  }
 0x19f   : > { %v1653_v36 = vpop.f32.mrb[12].mxu1  ;;  %v1637_v37 = vpop.f32.mrb[12].mxu0 }
 0x1a0   : > { %v961_v38 = vmul.f32 %v1653_v36, %v2086_v52  ;;  %v909_v39 = vpop.f32.mrb[13].mxu1  ;;  %v945_v40 = vmul.f32 %v1637_v37, %v2086_v52  ;;  %v845_v41 = vpop.f32.mrb[13].mxu0 }
 0x1a1   : > { %v959_v42 = vmul.f32 %v2086_v52, %v909_v39  ;;  %v1654_v43 = vpop.f32.mrb[14].mxu1  ;;  %v943_v45 = vmul.f32 %v2086_v52, %v845_v41  ;;  %v1638_v46 = vpop.f32.mrb[14].mxu0 }
 0x1a2   : > { %v1000_v44 = vadd.f32 %v2091_v53, %v961_v38  ;;  %v962_v47 = vmul.f32 %v1654_v43, %v2086_v52  ;;  %v912_v48 = vpop.f32.mrb[15].mxu1  ;;  %v984_v49 = vadd.f32 %v2091_v53, %v945_v40  ;;  %v946_v51 = vmul.f32 %v1638_v46, %v2086_v52  ;;  %v848_v54 = vpop.f32.mrb[15].mxu0 }
 0x1a3   : > { %v998_v50 = vadd.f32 %v2091_v53, %v959_v42  ;;  %v960_v55 = vmul.f32 %v2086_v52, %v912_v48  ;;  %v982_v56 = vadd.f32 %v2091_v53, %v943_v45  ;;  %v944_v58 = vmul.f32 %v2086_v52, %v848_v54 }
 0x1a4   : > { %v1001_v57 = vadd.f32 %v2091_v53, %v962_v47  ;;  %v985_v59 = vadd.f32 %v2091_v53, %v946_v51  ;;  %v1032_v61 = vmax.f32 %v1000_v44, 0.0  ;;  %v1016_v0 = vmax.f32 %v984_v49, 0.0 }
 0x1a5   : > { %v999_v60 = vadd.f32 %v2091_v53, %v960_v55  ;;  %v983_v63 = vadd.f32 %v2091_v53, %v944_v58  ;;  %v1030_v1 = vmax.f32 %v998_v50, 0.0  ;;  %v1014_v52 = vmax.f32 %v982_v56, 0.0 }
 0x1a6   : > { %v1033_v62 = vmax.f32 %v1001_v57, 0.0  ;;  %v1017_v2 = vmax.f32 %v985_v59, 0.0 }
 0x1a7   : > { %v1031_v3 = vmax.f32 %v999_v60, 0.0  ;;  %v1015_v5 = vmax.f32 %v983_v63, 0.0 }
 0x1a8   : > { %v1581_v4 = vpack.c.bf16 %v1033_v62, %v1032_v61  ;;  %v1541_v6 = vpack.c.bf16 %v1017_v2, %v1016_v0 }
 0x1a9   : > { %v1576_v7 = vpack.c.bf16 %v1031_v3, %v1030_v1  ;;  %v1536_v53 = vpack.c.bf16 %v1015_v5, %v1014_v52 }
 0x1aa   : > { %1597 = vst [vmem:[%s2112_s6 + $0x78] sm:$0xff] %v1581_v4   ;;  %1589 = vst [vmem:[%s2112_s6 + $0x38] sm:$0xff] %v1541_v6  }
 0x1ab   : > { %1596 = vst [vmem:[%s2112_s6 + $0x70] sm:$0xff] %v1576_v7   ;;  %1588 = vst [vmem:[%s2112_s6 + $0x30] sm:$0xff] %v1536_v53  }
 0x1ac   : > { %1787 = shalt.err (!%p1784_p5)
}
 0x1ad   : > { %s1788_s22 = scalar_lea.hbm %s2179_s11, 2048  ;;  %s1792_s29 = scalar_lea.hbm %s2239_s4, 4096 }
 0x1ae   : > { %p1789_p6 = scmp.ne.s32.totalorder %s2179_s11, %s1788_s22  ;;  %p1793_p10 = scmp.lt.u32.totalorder %s2179_s11, %s2239_s4 }
 0x1af   : > { %p1794_p11 = scmp.lt.u32.totalorder %s1792_s29, %s1788_s22  ;;  %p1796_p13 = scmp.lt.u32.totalorder %s1788_s22, %s2179_s11 }
 0x1b0   : > { %p1790_p7 = pnand %p1789_p6, %p1924_p4 }
 0x1b1   : > { %p1795_p12 = por %p1794_p11, %p1793_p10 }
 0x1b2   : > { %p1791_p9 = pneg %p1790_p7 }
 0x1b3   : > { %p1797_p0 = por %p1796_p13, %p1795_p12 }
 0x1b5   : > { %p1798_p1 = pnand %p1797_p0, %p1791_p9 }
 0x1b7   : > { %1801 = shalt.err (!%p1798_p1)
}
 0x1b8   : > { %s1857_s6 = smov 64   ;;  %s1858_s7 = smov 4  }
 0x1b9   : > { %1664 = dma.vmem_to_hbm [thread:$0]  (%p1924_p4), %s2181_s8, 2048, %s2179_s11, %s2189_s18, %s1857_s6, %s1857_s6, %s1858_s7  }
 0x1ba PF: > { %p1670_p2 = scmp.ge.s32.totalorder %s1852_s20, 2  ;;  %s1225_s9 = sand.u32 1, %s1832_s15  }
 0x1bb   : > { %s1226_s10 = scalar_lea.sflag [#allocation3], %s1225_s9 }
 0x1bc   : > { %p1667_p3 = pnand %p1670_p2, %p1931_p8 }
 0x1be   : > { %1827 = dma.done.wait (!%p1667_p3), %s1226_s10, 2048  }
 0x1bf   : > { %1829 = vsyncadd (!%p1667_p3), %s1226_s10, 4294965248  ;;  %s17_s20 = sadd.s32 1, %s1852_s20   ;;  %s2242_s15 = smov %s1836_s16 }
 0x1c0   : > { %p14_p5 = scmp.ge.s32.totalorder %s17_s20, 4   ;;  %s2243_s16 = smov %s1840_s17 }
 0x1c1   : > { %s2244_s17 = smov %s1937_s28  ;;  %s2245_s18 = smov %s1848_s19 }
 0x1c2   : > { %s2246_s19 = smov %s2248_s23  ;;  %16 = sbr.rel (!%p14_p5) target bundleno = 4 (0x4), region = 74 }
 0x1c9   :  { %1231 = vsyncpa [#allocation3], 1 }
 0x1ca   :  { %1233 = vsyncpa [#allocation3 + $0x1], 1 }

</bundles_post_ra>
